<compile_context>
chip_gen: v5e
topology: v5e:2x2
jax: 0.10.0
libtpu: 0.0.40
codegen_flags: <defaults>
</compile_context>

<pallas_src>
import functools

import jax
import jax.numpy as jnp
import numpy as np
from jax.experimental import pallas as pl
from jax.experimental.pallas import tpu as pltpu


def _pixel_normalize_kernel(mean_ref, inv_std_ref, x_ref, o_ref):
    # mean_ref / inv_std_ref: (B*C, 1) VMEM tiles (constant index_map, fetched
    # once), broadcast along the lane axis in-register.
    # x_ref / o_ref: (B*C, TILE) lane-dense tiles of the flattened image.
    x = x_ref[...].astype(jnp.float32)          # cast-on-load (uint8/bf16 ok)
    o_ref[...] = ((x - mean_ref[...]) * inv_std_ref[...]).astype(o_ref.dtype)


def _choose_spatial_tile(hw, rows, in_bytes, out_bytes):
    """Pick (tile, n_tiles) for the flattened H*W lane axis.

    Targets ~2 MiB for the larger of the in/out block so double-buffered
    in+out stays under ~8 MiB (v5e scoped-VMEM default is 16 MiB; v7x has
    32 MiB scoped of 64 MiB physical).  Forces >= 2 grid steps when the
    extent allows so both v7x TensorCores get work.
    """
    target = 2 * 1024 * 1024
    per_lane = rows * max(in_bytes, out_bytes)
    tile = max(128, (target // max(per_lane, 1)) // 128 * 128)
    if tile >= hw:
        if hw >= 256:
            half = -(-hw // 2)                    # ceil(hw / 2)
            tile = -(-half // 128) * 128          # round up to 128 (lane-dense)
        else:
            tile = hw                             # full extent (any size ok)
    n_tiles = -(-hw // tile)                      # ceil; last block may be ragged
    return tile, n_tiles


@functools.partial(jax.jit, static_argnames=("out_dtype", "donate_input"))
def gaussian4d_pixel_normalize(x, pixel_mean, pixel_std, out_dtype=None,
                               donate_input=False):
    """Pallas implementation of the Gaussian4D pixel_mean/pixel_std preprocess.

    x: [B, C, H, W] (NCHW, like PyTorch), any float/uint8 dtype
    pixel_mean, pixel_std: [C]
    returns: [B, C, H, W] out_dtype = (x - mean) / std  (per channel)
    """
    B, C, H, W = x.shape
    HW = H * W
    BC = B * C

    if out_dtype is None:
        out_dtype = x.dtype if jnp.issubdtype(x.dtype, jnp.floating) else jnp.float32
    out_dtype = jnp.dtype(out_dtype)
    in_bytes = jnp.dtype(x.dtype).itemsize

    tile, n_tiles = _choose_spatial_tile(HW, BC, in_bytes, out_dtype.itemsize)

    # Free view: merging contiguous dims (B,C)->B*C and (H,W)->H*W is a
    # bitcast under jit -- no extra HBM pass.
    x2d = x.reshape(BC, HW)

    # Per-row (= per (batch, channel)) constants; B*C elements, negligible.
    mean2d = jnp.tile(pixel_mean.astype(jnp.float32), B).reshape(BC, 1)
    inv2d = jnp.tile(1.0 / pixel_std.astype(jnp.float32), B).reshape(BC, 1)

    cost = pl.CostEstimate(
        flops=2 * BC * HW,
        transcendentals=0,
        bytes_accessed=BC * HW * (in_bytes + out_dtype.itemsize) + 2 * BC * 4,
    )

    const_spec = pl.BlockSpec((BC, 1), lambda t: (0, 0))     # fetched once
    data_spec = pl.BlockSpec((BC, tile), lambda t: (0, t))   # lane-dense slabs

    aliases = {}
    if donate_input and jnp.dtype(x.dtype) == out_dtype:
        # In-place normalization; only profitable if the caller actually
        # donates x (otherwise XLA inserts a defensive copy).
        aliases = {2: 0}

    out2d = pl.pallas_call(
        _pixel_normalize_kernel,
        out_shape=jax.ShapeDtypeStruct((BC, HW), out_dtype),
        grid=(n_tiles,),
        in_specs=[const_spec, const_spec, data_spec],
        out_specs=data_spec,
        compiler_params=pltpu.CompilerParams(
            dimension_semantics=("parallel",)),
        cost_estimate=cost,
        input_output_aliases=aliases,
    )(mean2d, inv2d, x2d)

    return out2d.reshape(B, C, H, W)


class Gaussian4DJax:
    """Minimal JAX counterpart of Gaussian4D.

    pixel_mean / pixel_std / background are initialized deterministically
    exactly as the PyTorch __init__ specifies.
    """

    def __init__(self, white_background=False):
        self.pixel_mean = jnp.asarray([0.485, 0.456, 0.406], dtype=jnp.float32)
        self.pixel_std = jnp.asarray([0.229, 0.224, 0.225], dtype=jnp.float32)
        bg = [1.0, 1.0, 1.0] if white_background else [0.0, 0.0, 0.0]
        self.background = jnp.asarray(bg, dtype=jnp.float32)
        # TODO(synk): GaussianModel / Scene construction and the CUDA
        # differentiable Gaussian rasterizer have no Pallas equivalent.

    def forward(self, batch_dict, out_dtype=None, donate_input=False):
        # The PyTorch forward() body is `pass`; the only concrete tensor
        # computation implied by the module is the pixel normalization.
        x = batch_dict["images"]  # [B, C, H, W]
        return gaussian4d_pixel_normalize(
            x, self.pixel_mean, self.pixel_std,
            out_dtype=out_dtype, donate_input=donate_input)


if __name__ == "__main__":
    model = Gaussian4DJax(white_background=False)

    # Case 1: small, lane-aligned spatial extent (B*C = 6 rows, HW = 256,
    # split into 2 parallel grid steps).
    B, C, H, W = 2, 3, 16, 16  # C = 3 matches pixel_mean / pixel_std
    x = jax.random.uniform(jax.random.PRNGKey(0), (B, C, H, W),
                           dtype=jnp.float32)
    out = jax.block_until_ready(model.forward({"images": x}))
    ref = (x - model.pixel_mean.reshape(1, C, 1, 1)) / \
        model.pixel_std.reshape(1, C, 1, 1)
    np.testing.assert_allclose(np.asarray(out), np.asarray(ref),
                               rtol=1e-5, atol=1e-6)

    # Case 2: non-128-multiple spatial extent (HW = 1600 -> ragged edge block
    # masked by Pallas; no wrapper pad/slice).
    B2, C2, H2, W2 = 1, 3, 40, 40
    x2 = jax.random.uniform(jax.random.PRNGKey(1), (B2, C2, H2, W2),
                            dtype=jnp.float32)
    out2 = jax.block_until_ready(model.forward({"images": x2}))
    ref2 = (x2 - model.pixel_mean.reshape(1, C2, 1, 1)) / \
        model.pixel_std.reshape(1, C2, 1, 1)
    np.testing.assert_allclose(np.asarray(out2), np.asarray(ref2),
                               rtol=1e-5, atol=1e-6)

    # Case 3: bf16 output (halves store traffic; recommended default on v5e).
    out3 = jax.block_until_ready(
        model.forward({"images": x}, out_dtype=jnp.bfloat16))
    np.testing.assert_allclose(np.asarray(out3, dtype=np.float32),
                               np.asarray(ref), rtol=1e-2, atol=1e-2)

    print("KERNEL_OK")
</pallas_src>

<mosaic_0001>
module attributes {stable_mosaic.version = 11 : i64} {
  func.func @_pixel_normalize_kernel(%arg0: i32, %arg1: memref<6x1xf32, #tpu.memory_space<vmem>>, %arg2: memref<6x1xf32, #tpu.memory_space<vmem>>, %arg3: memref<6x128xf32, #tpu.memory_space<vmem>>, %arg4: memref<6x128xf32, #tpu.memory_space<vmem>>) attributes {dimension_semantics = [#tpu.dimension_semantics<parallel>], iteration_bounds = array<i64: 2>, scalar_prefetch = 0 : i64, scratch_operands = 0 : i64, tpu.core_type = #tpu.core_type<tc>, window_params = [{pipeline_mode = #tpu.pipeline_mode<synchronous>, transform_indices = @transform_0, window_bounds = array<i64: 6, 1>}, {pipeline_mode = #tpu.pipeline_mode<synchronous>, transform_indices = @transform_1, window_bounds = array<i64: 6, 1>}, {transform_indices = @transform_2, window_bounds = array<i64: 6, 128>}, {transform_indices = @transform_3, window_bounds = array<i64: 6, 128>}]} {
    %c0 = arith.constant 0 : index
    %c0_0 = arith.constant 0 : index
    %0 = vector.load %arg3[%c0, %c0_0] : memref<6x128xf32, #tpu.memory_space<vmem>>, vector<6x128xf32>
    %c0_1 = arith.constant 0 : index
    %c0_2 = arith.constant 0 : index
    %1 = vector.load %arg1[%c0_1, %c0_2] : memref<6x1xf32, #tpu.memory_space<vmem>>, vector<6x1xf32>
    %2 = vector.broadcast %1 : vector<6x1xf32> to vector<6x128xf32>
    %3 = arith.subf %0, %2 : vector<6x128xf32>
    %c0_3 = arith.constant 0 : index
    %c0_4 = arith.constant 0 : index
    %4 = vector.load %arg2[%c0_3, %c0_4] : memref<6x1xf32, #tpu.memory_space<vmem>>, vector<6x1xf32>
    %5 = vector.broadcast %4 : vector<6x1xf32> to vector<6x128xf32>
    %6 = arith.mulf %3, %5 : vector<6x128xf32>
    %c0_5 = arith.constant 0 : index
    %c0_6 = arith.constant 0 : index
    %7 = vector.load %arg4[%c0_5, %c0_6] : memref<6x128xf32, #tpu.memory_space<vmem>>, vector<6x128xf32>
    tpu.vector_store %arg4[%c0_5, %c0_6], %6 {strides = array<i32>} : memref<6x128xf32, #tpu.memory_space<vmem>>, vector<6x128xf32>,
    return
  }
  func.func @transform_0(%arg0: i32) -> (i32, i32) {
    %c0_i32 = arith.constant 0 : i32
    %c0_i32_0 = arith.constant 0 : i32
    %c0_i32_1 = arith.constant 0 : i32
    return %c0_i32, %c0_i32_0 : i32, i32
  }
  func.func @transform_1(%arg0: i32) -> (i32, i32) {
    %c0_i32 = arith.constant 0 : i32
    %c0_i32_0 = arith.constant 0 : i32
    %c0_i32_1 = arith.constant 0 : i32
    return %c0_i32, %c0_i32_0 : i32, i32
  }
  func.func @transform_2(%arg0: i32) -> (i32, i32) {
    %c0_i32 = arith.constant 0 : i32
    %c0_i32_0 = arith.constant 0 : i32
    return %c0_i32, %arg0 : i32, i32
  }
  func.func @transform_3(%arg0: i32) -> (i32, i32) {
    %c0_i32 = arith.constant 0 : i32
    %c0_i32_0 = arith.constant 0 : i32
    return %c0_i32, %arg0 : i32, i32
  }
}

</mosaic_0001>

<bundles_post_ra>
// kernel: tile.0
= control target key start
LH: loop header
LB: loop body
LE: loop exit
PB: predicated region body
PF: predicated region fallthrough
CT: control target
= control target key end

     0   :  { %s26_s8 = smov 126   ;;  %vm7_vm0 = vcmask 7168   ;;  %s49_s0 = inlined_call_operand.vmem [shape: f32[2,3], index: 0, kind: input, shape index: {}]   ;;  %s50_s1 = inlined_call_operand.vmem [shape: f32[6,1], index: 1, kind: output, shape index: {}]  }
   0x1   :  { %v4_v0 = vld [vmem:[%s49_s0] sm:$0x3]  ;;  %s25_s0 = smov 127  }
   0x2   :  { %5 = vst [vmem:[#allocation0] sm:$0x3] %v4_v0 }
   0x9   :  { %v9_v1 = vld [vmem:[#allocation0] sm:$0x3]  }
   0xa   :  { %10 = vrot.lane.b32.xlu0 %v9_v1, %s25_s0  ;;  %v15_v2 = vld [vmem:[#allocation0] sm:$0x3]  }
   0xb   :  { %v6_v3 = vld [vmem:[#allocation0] sm:$0x3]  }
   0xc   :  { %8 = vst.msk [vmem:[%s50_s1] ss:$3 sm:$0x3] %vm7_vm0, %v6_v3  }
  0x12   :  { %16 = vrot.lane.b32.xlu0 %v15_v2, %s26_s8 }
  0x7c   :  { %v11_v4 = vpop.permute.xlu0 %10  }
  0x7d   :  { %21 = vst.msk [vmem:[%s50_s1 + $0x1] ss:$3 sm:$0x3] %vm7_vm0, %v11_v4  }
  0x84   :  { %v17_v5 = vpop.permute.xlu0 %16  }
  0x85   :  { %22 = vst.msk [vmem:[%s50_s1 + $0x2] ss:$3 sm:$0x3] %vm7_vm0, %v17_v5  }

// kernel: tile.18
= control target key start
LH: loop header
LB: loop body
LE: loop exit
PB: predicated region body
PF: predicated region fallthrough
CT: control target
= control target key end

     0   :  { %s22_s0 = inlined_call_operand.vmem [shape: f32[3], index: 0, kind: input, shape index: {}]   ;;  %s23_s1 = inlined_call_operand.vmem [shape: f32[2,3], index: 1, kind: output, shape index: {}]  }
   0x1   :  { %v4_v0 = vld [vmem:[%s22_s0] ss:$0 sm:$0xff] }
   0x2   :  { %5 = vst [vmem:[%s23_s1] sm:$0x3] %v4_v0 }

// kernel: gaussian4d_pixel_normalize.1
= control target key start
LH: loop header
LB: loop body
LE: loop exit
PB: predicated region body
PF: predicated region fallthrough
CT: control target
= control target key end

     0   :  { %s283_s12 = smov 0   ;;  %s300_s0 = inlined_call_operand.vmem [shape: f32[6,1], index: 0, kind: input, shape index: {}]   ;;  %s301_s1 = inlined_call_operand.vmem [shape: f32[6,1], index: 1, kind: input, shape index: {}]   ;;  %s302_s2 = inlined_call_operand.vmem [shape: f32[6,256], index: 2, kind: input, shape index: {}]   ;;  %s303_s3 = inlined_call_operand.vmem [shape: f32[6,256], index: 3, kind: output, shape index: {}]  }
   0x1 LB: > { %s235_s13 = sadd.s32 4294967295, %s260_s12   ;;  %p239_p0 = scmp.ge.s32.totalorder %s260_s12, 1  ;;  %s260_s12 = sphi %s283_s12, %s13_s12  }
   0x2   : > { %p136_p1 = scmp.lt.s32.totalorder %s260_s12, 3 }
   0x4   : > { %p137_p2 = pnand %p239_p0, %p136_p1 }
   0x5   : > { %p158_p3 = scmp.lt.s32.totalorder (!%p137_p2), %s235_s13, 1 }
   0x6   : > { %140 = sbr.rel (%p137_p2) target bundleno = 139 (0x8b), region = 32 }
   0xb   : > { %v167_v0 = vld [vmem:[%s300_s0] sm:$0x3f]  ;;  %v262_v1 = vmov 0   ;;  %s305_s13 = smov (!%p158_p3, %s235_s13), 1 }
   0xc   : > { %253 = vset.pattern.permute.xlu0 %v262_v1  ;;  %v174_v2 = vld [vmem:[%s301_s1] sm:$0x3f]  ;;  %s240_s18 = sshll.u32 %s305_s13, 3 }
   0xd   : > { %170 = vperm.xlu0 %253, %v167_v0   ;;  %s161_s21 = scalar_lea.vmem %s302_s2, %s240_s18  ;;  %s165_s24 = scalar_lea.vmem %s303_s3, %s240_s18 }
   0xe   : > { %v166_v4 = vld [vmem:[%s161_s21] sm:$0x3f] }
  0x15   : > { %177 = vperm.xlu0 %253, %v174_v2  }
  0x7f   : > { %v171_v3 = vpop.permute.xlu0 %170 }
  0x80   : > { %v173_v5 = vsub.f32 %v166_v4, %v171_v3 }
  0x87   : > { %v178_v6 = vpop.permute.xlu0 %177 }
  0x88   : > { %v180_v7 = vmul.f32 %v178_v6, %v173_v5 }
  0x8a   : > { %181 = vst [vmem:[%s165_s24] sm:$0x3f] %v180_v7 }
  0x8b PF: > { %s13_s12 = sadd.s32 1, %s260_s12  }
  0x8c   : > { %p10_p4 = scmp.ge.s32.totalorder %s13_s12, 4  }
  0x8e   :  { %12 = sbr.rel (!%p10_p4) target bundleno = 1 (0x1), region = 62 }

</bundles_post_ra>
